<compile_context>
chip_gen: v7x
topology: tpu7x:2x2x1
jax: 0.10.0
libtpu: 0.0.40
codegen_flags: <defaults>
</compile_context>

<pallas_src>
import functools

import jax
import jax.numpy as jnp
from jax.experimental import pallas as pl
from jax.experimental.pallas import tpu as pltpu


def _silu(x):
    return x * (1.0 / (1.0 + jnp.exp(-x)))


# ------------------------------ Pallas kernel ------------------------------


def _head_kernel(x_ref, ws_ref, bs_ref, *rest, H, W, L):
    """Fused YOLOX head (stem + both 3x3 chains + all prediction convs) for one image.

    Refs (L > 0): x, w_stem, b_stem,
                  w_cls(L,9,C,C), b_cls(L,1,C), w_reg(L,9,C,C), b_reg(L,1,C),
                  w_pred_cls(C,P), w_pred_reg(C,P), b_pred(1,P),
                  out(HW,P), scratch(H+2, W+16, C)
    Refs (L == 0): x, w_stem, b_stem, w_pred_cls, w_pred_reg, b_pred, out
    """
    if L > 0:
        (wcc_ref, bcc_ref, wcr_ref, bcr_ref,
         wpc_ref, wpr_ref, bp_ref, o_ref, buf_ref) = rest
    else:
        wpc_ref, wpr_ref, bp_ref, o_ref = rest

    C = ws_ref.shape[-1]
    HW = H * W
    PADX = 8  # left halo width (sublane dim) -> interior stores are 8-aligned

    # ---- stem: 1x1 conv (BN scale folded into weights) + bias + SiLU ----
    stem = _silu(jnp.dot(x_ref[...], ws_ref[...],
                         preferred_element_type=jnp.float32) + bs_ref[...])  # (HW, C)

    if L == 0:
        cls_feat = reg_feat = stem
    else:
        # Zero once per step; the halo region is never written afterwards, so it
        # implements the 3x3 convs' zero padding for every layer of both chains.
        buf_ref[...] = jnp.zeros_like(buf_ref)

        def put(feat):
            buf_ref[1:H + 1, PADX:PADX + W, :] = feat.reshape(H, W, C)

        def window(k):
            dy, dx = divmod(k, 3)
            return buf_ref[dy:dy + H, PADX - 1 + dx:PADX - 1 + dx + W, :].reshape(HW, C)

        # ---- layer 0: both branches share the stem feature -> read windows once.
        put(stem)
        acc_c = acc_r = None
        for k in range(9):
            win = window(k)
            pc = jnp.dot(win, wcc_ref[0, k], preferred_element_type=jnp.float32)
            pr = jnp.dot(win, wcr_ref[0, k], preferred_element_type=jnp.float32)
            acc_c = pc if acc_c is None else acc_c + pc
            acc_r = pr if acc_r is None else acc_r + pr
        cls_feat = _silu(acc_c + bcc_ref[0])
        reg_feat = _silu(acc_r + bcr_ref[0])

        def conv3(feat, w_ref, b_ref, l):
            put(feat)
            acc = None
            for k in range(9):
                p = jnp.dot(window(k), w_ref[l, k], preferred_element_type=jnp.float32)
                acc = p if acc is None else acc + p
            return _silu(acc + b_ref[l])

        for l in range(1, L):
            cls_feat = conv3(cls_feat, wcc_ref, bcc_ref, l)
            reg_feat = conv3(reg_feat, wcr_ref, bcr_ref, l)

    # ---- prediction: cls columns come from cls_feat, reg/obj columns from reg_feat,
    #      already permuted to the torch output channel order in the wrapper.
    out = (jnp.dot(cls_feat, wpc_ref[...], preferred_element_type=jnp.float32)
           + jnp.dot(reg_feat, wpr_ref[...], preferred_element_type=jnp.float32)
           + bp_ref[...])
    o_ref[...] = out.astype(o_ref.dtype)


def _run_head(x2d, ws, bs, wc_cls, bc_cls, wc_reg, bc_reg, wpc, wpr, bp,
              *, n, h, w, num_layers):
    m, c1 = x2d.shape
    c = ws.shape[-1]
    p = wpc.shape[-1]
    hw = h * w
    assert m == n * hw
    assert hw % 8 == 0, "H*W must be a multiple of 8 for the row-flattened layout"
    L = num_layers

    in_specs = [
        pl.BlockSpec((hw, c1), lambda i: (i, 0)),
        pl.BlockSpec((c1, c), lambda i: (0, 0)),
        pl.BlockSpec((1, c), lambda i: (0, 0)),
    ]
    args = [x2d, ws, bs]
    scratch = []
    if L > 0:
        in_specs += [
            pl.BlockSpec((L, 9, c, c), lambda i: (0, 0, 0, 0)),
            pl.BlockSpec((L, 1, c), lambda i: (0, 0, 0)),
            pl.BlockSpec((L, 9, c, c), lambda i: (0, 0, 0, 0)),
            pl.BlockSpec((L, 1, c), lambda i: (0, 0, 0)),
        ]
        args += [wc_cls, bc_cls, wc_reg, bc_reg]
        scratch = [pltpu.VMEM((h + 2, w + 16, c), jnp.float32)]
    in_specs += [
        pl.BlockSpec((c, p), lambda i: (0, 0)),
        pl.BlockSpec((c, p), lambda i: (0, 0)),
        pl.BlockSpec((1, p), lambda i: (0, 0)),
    ]
    args += [wpc, wpr, bp]

    return pl.pallas_call(
        functools.partial(_head_kernel, H=h, W=w, L=L),
        out_shape=jax.ShapeDtypeStruct((m, p), jnp.float32),
        grid=(n,),
        in_specs=in_specs,
        out_specs=pl.BlockSpec((hw, p), lambda i: (i, 0)),
        scratch_shapes=scratch,
        compiler_params=pltpu.CompilerParams(
            dimension_semantics=("parallel",),
            vmem_limit_bytes=32 * 1024 * 1024),
    )(*args)


# ----------------------------- forward wrapper -----------------------------


def multi_yolox_head_forward(x_nchw, params, num_layers):
    """Pallas forward of MultiYOLOXHead (eval-mode, folded BatchNorm).

    `num_layers` replaces the torch module's per-call `np.random.choice(4)`
    with an explicit (static) argument in [0, 3].
    """
    assert 0 <= num_layers <= 3
    n, c1, h, w = x_nchw.shape
    c = params["stem_w"].shape[-1]
    na, nc = params["na"], params["nc"]
    eps = 1e-5

    # NCHW -> NHWC -> (rows, channels); channels sit on TPU lanes.
    x2d = jnp.transpose(x_nchw, (0, 2, 3, 1)).astype(jnp.float32).reshape(n * h * w, c1)

    def fold(wgt, bn):
        gamma, beta, mean, var = bn
        scale = gamma / jnp.sqrt(var + eps)
        return wgt * scale, beta - mean * scale  # BN scale folded into weights

    ws, bsv = fold(params["stem_w"], params["stem_bn"])
    bs = bsv.reshape(1, c)

    def fold_chain(wlist, bnlist):
        if num_layers == 0:
            return None, None
        wk, bk = [], []
        for l in range(num_layers):
            wf, bf = fold(wlist[l], bnlist[l])           # (3,3,c,c), (c,)
            wk.append(wf.reshape(9, c, c))
            bk.append(bf.reshape(1, c))
        return jnp.stack(wk), jnp.stack(bk)              # (L,9,c,c), (L,1,c)

    wc_cls, bc_cls = fold_chain(params["cls_w"], params["cls_bn"])
    wc_reg, bc_reg = fold_chain(params["reg_w"], params["reg_bn"])

    # Pre-permute the three 1x1 prediction heads into the torch output channel
    # order (per anchor: [reg(4), obj(1), cls(nc)]).  cls columns multiply
    # cls_feat, reg/obj columns multiply reg_feat; zero-fill the other block.
    p_out = na * (5 + nc)
    z4 = jnp.zeros((c, na, 4), jnp.float32)
    z1 = jnp.zeros((c, na, 1), jnp.float32)
    znc = jnp.zeros((c, na, nc), jnp.float32)
    wpr = jnp.concatenate([params["regp_w"].reshape(c, na, 4),
                           params["objp_w"].reshape(c, na, 1),
                           znc], axis=2).reshape(c, p_out)
    wpc = jnp.concatenate([z4, z1,
                           params["clsp_w"].reshape(c, na, nc)], axis=2).reshape(c, p_out)
    bp = jnp.concatenate([params["regp_b"].reshape(na, 4),
                          params["objp_b"].reshape(na, 1),
                          params["clsp_b"].reshape(na, nc)], axis=1).reshape(1, p_out)

    out2d = _run_head(x2d, ws, bs, wc_cls, bc_cls, wc_reg, bc_reg, wpc, wpr, bp,
                      n=n, h=h, w=w, num_layers=num_layers)

    # (N*H*W, P) -> (N, P, H, W); columns are already in torch channel order.
    y = out2d.reshape(n, h, w, p_out)
    return jnp.transpose(y, (0, 3, 1, 2))


# --------------------------- params + reference ----------------------------


def init_params(key, c1, nc, na, w=1.0):
    """Deterministic synthetic parameters (HWIO conv weights, raw BN stats)."""
    c = int(256 * w)
    keys = iter(jax.random.split(key, 32))

    def bn(nch):
        k0, k1, k2, k3 = jax.random.split(next(keys), 4)
        gamma = jax.random.uniform(k0, (nch,), minval=0.5, maxval=1.5)
        beta = 0.1 * jax.random.normal(k1, (nch,))
        mean = 0.1 * jax.random.normal(k2, (nch,))
        var = jax.random.uniform(k3, (nch,), minval=0.5, maxval=1.5)
        return (gamma.astype(jnp.float32), beta.astype(jnp.float32),
                mean.astype(jnp.float32), var.astype(jnp.float32))

    stem_w = 0.3 * jax.random.normal(next(keys), (c1, c), dtype=jnp.float32)
    stem_bn = bn(c)
    cls_w, cls_bn, reg_w, reg_bn = [], [], [], []
    for _ in range(3):
        cls_w.append(0.04 * jax.random.normal(next(keys), (3, 3, c, c), dtype=jnp.float32))
        cls_bn.append(bn(c))
    for _ in range(3):
        reg_w.append(0.04 * jax.random.normal(next(keys), (3, 3, c, c), dtype=jnp.float32))
        reg_bn.append(bn(c))

    def head(cout):
        wk = 0.05 * jax.random.normal(next(keys), (c, cout), dtype=jnp.float32)
        bk = 0.1 * jax.random.normal(next(keys), (cout,), dtype=jnp.float32)
        return wk, bk

    clsp_w, clsp_b = head(nc * na)
    regp_w, regp_b = head(4 * na)
    objp_w, objp_b = head(1 * na)

    return dict(nc=nc, na=na,
                stem_w=stem_w, stem_bn=stem_bn,
                cls_w=cls_w, cls_bn=cls_bn, reg_w=reg_w, reg_bn=reg_bn,
                clsp_w=clsp_w, clsp_b=clsp_b,
                regp_w=regp_w, regp_b=regp_b,
                objp_w=objp_w, objp_b=objp_b)


def reference_forward(x_nchw, params, num_layers):
    """Pure-JAX reference (lax.conv, HIGHEST precision) to validate the kernel."""
    dn = ("NHWC", "HWIO", "NHWC")
    prec = jax.lax.Precision.HIGHEST
    eps = 1e-5
    n, c1, h, w = x_nchw.shape
    na, nc = params["na"], params["nc"]
    c = params["stem_w"].shape[-1]
    x = jnp.transpose(x_nchw, (0, 2, 3, 1)).astype(jnp.float32)

    def conv(inp, w_hwio, pad):
        return jax.lax.conv_general_dilated(inp, w_hwio, (1, 1), pad,
                                            dimension_numbers=dn, precision=prec)

    def bn_silu(y, bn):
        gamma, beta, mean, var = bn
        scale = gamma / jnp.sqrt(var + eps)
        return _silu(y * scale + (beta - mean * scale))

    stem = bn_silu(conv(x, params["stem_w"].reshape(1, 1, c1, c), "VALID"),
                   params["stem_bn"])
    cls_feat = reg_feat = stem
    for l in range(num_layers):
        cls_feat = bn_silu(conv(cls_feat, params["cls_w"][l], ((1, 1), (1, 1))),
                           params["cls_bn"][l])
        reg_feat = bn_silu(conv(reg_feat, params["reg_w"][l], ((1, 1), (1, 1))),
                           params["reg_bn"][l])

    cls = conv(cls_feat, params["clsp_w"].reshape(1, 1, c, nc * na), "VALID") + params["clsp_b"]
    reg = conv(reg_feat, params["regp_w"].reshape(1, 1, c, 4 * na), "VALID") + params["regp_b"]
    obj = conv(reg_feat, params["objp_w"].reshape(1, 1, c, na), "VALID") + params["objp_b"]

    def nchw(t):
        return jnp.transpose(t, (0, 3, 1, 2))

    cls = nchw(cls).reshape(n, na, nc, h, w)
    reg = nchw(reg).reshape(n, na, 4, h, w)
    obj = nchw(obj).reshape(n, na, 1, h, w)
    y = jnp.concatenate([reg, obj, cls], axis=2)
    return y.reshape(n, na * (5 + nc), h, w)


# ---------------------------------- main ------------------------------------

if __name__ == "__main__":
    N, C1, H, W = 2, 4, 16, 16     # x: NCHW as in PyTorch
    NC, NA, WIDTH = 3, 2, 0.5      # c = int(256 * 0.5) = 128 (lane-dense)

    key = jax.random.PRNGKey(0)
    kx, kp = jax.random.split(key)
    x = jax.random.normal(kx, (N, C1, H, W), dtype=jnp.float32)
    params = init_params(kp, C1, NC, NA, w=WIDTH)

    # TODO(synk): the torch module draws num_layers = np.random.choice(4) per
    # forward; here it is a deterministic argument — validate every draw 0..3.
    for num_layers in range(4):
        out = jax.block_until_ready(multi_yolox_head_forward(x, params, num_layers))
        assert out.shape == (N, NA * (5 + NC), H, W), out.shape
        ref = reference_forward(x, params, num_layers)
        max_err = float(jnp.max(jnp.abs(out - ref)))
        assert bool(jnp.allclose(out, ref, atol=1e-2, rtol=1e-2)), (num_layers, max_err)

    print("KERNEL_OK")
</pallas_src>

<mosaic_0001>
module attributes {stable_mosaic.version = 11 : i64} {
  func.func @_head_kernel(%arg0: i32, %arg1: memref<256x4xf32, #tpu.memory_space<vmem>>, %arg2: memref<4x128xf32, #tpu.memory_space<vmem>>, %arg3: memref<1x128xf32, #tpu.memory_space<vmem>>, %arg4: memref<128x16xf32, #tpu.memory_space<vmem>>, %arg5: memref<128x16xf32, #tpu.memory_space<vmem>>, %arg6: memref<1x16xf32, #tpu.memory_space<vmem>>, %arg7: memref<256x16xf32, #tpu.memory_space<vmem>>) attributes {dimension_semantics = [#tpu.dimension_semantics<parallel>], iteration_bounds = array<i64: 2>, scalar_prefetch = 0 : i64, scratch_operands = 0 : i64, tpu.core_type = #tpu.core_type<tc>, window_params = [{transform_indices = @transform_0, window_bounds = array<i64: 256, 4>}, {pipeline_mode = #tpu.pipeline_mode<synchronous>, transform_indices = @transform_1, window_bounds = array<i64: 4, 128>}, {pipeline_mode = #tpu.pipeline_mode<synchronous>, transform_indices = @transform_2, window_bounds = array<i64: 1, 128>}, {pipeline_mode = #tpu.pipeline_mode<synchronous>, transform_indices = @transform_3, window_bounds = array<i64: 128, 16>}, {pipeline_mode = #tpu.pipeline_mode<synchronous>, transform_indices = @transform_4, window_bounds = array<i64: 128, 16>}, {pipeline_mode = #tpu.pipeline_mode<synchronous>, transform_indices = @transform_5, window_bounds = array<i64: 1, 16>}, {transform_indices = @transform_6, window_bounds = array<i64: 256, 16>}]} {
    %c0 = arith.constant 0 : index
    %c0_0 = arith.constant 0 : index
    %0 = vector.load %arg1[%c0, %c0_0] : memref<256x4xf32, #tpu.memory_space<vmem>>, vector<256x4xf32>
    %c0_1 = arith.constant 0 : index
    %c0_2 = arith.constant 0 : index
    %1 = vector.load %arg2[%c0_1, %c0_2] : memref<4x128xf32, #tpu.memory_space<vmem>>, vector<4x128xf32>
    %cst = arith.constant dense<0.000000e+00> : vector<256x128xf32>
    %2 = tpu.matmul %0, %1, %cst {dimension_numbers = #tpu.dot_dimension_numbers<[1], [0], [0], [1], [0, 0, 1, 1], [], []>} : vector<256x4xf32>, vector<4x128xf32>, vector<256x128xf32> -> vector<256x128xf32>
    %c0_3 = arith.constant 0 : index
    %c0_4 = arith.constant 0 : index
    %3 = vector.load %arg3[%c0_3, %c0_4] : memref<1x128xf32, #tpu.memory_space<vmem>>, vector<1x128xf32>
    %4 = vector.broadcast %3 : vector<1x128xf32> to vector<256x128xf32>
    %5 = arith.addf %2, %4 : vector<256x128xf32>
    %cst_5 = arith.constant 0.000000e+00 : f32
    %6 = vector.broadcast %cst_5 : f32 to vector<256x128xf32>
    %7 = arith.subf %6, %5 : vector<256x128xf32>
    %8 = math.exp %7 : vector<256x128xf32>
    %cst_6 = arith.constant 1.000000e+00 : f32
    %9 = vector.broadcast %cst_6 : f32 to vector<256x128xf32>
    %10 = arith.addf %9, %8 : vector<256x128xf32>
    %cst_7 = arith.constant 1.000000e+00 : f32
    %11 = vector.broadcast %cst_7 : f32 to vector<256x128xf32>
    %12 = arith.divf %11, %10 : vector<256x128xf32>
    %13 = arith.mulf %5, %12 : vector<256x128xf32>
    %c0_8 = arith.constant 0 : index
    %c0_9 = arith.constant 0 : index
    %14 = vector.load %arg4[%c0_8, %c0_9] : memref<128x16xf32, #tpu.memory_space<vmem>>, vector<128x16xf32>
    %cst_10 = arith.constant dense<0.000000e+00> : vector<256x16xf32>
    %15 = tpu.matmul %13, %14, %cst_10 {dimension_numbers = #tpu.dot_dimension_numbers<[1], [0], [0], [1], [0, 0, 1, 1], [], []>} : vector<256x128xf32>, vector<128x16xf32>, vector<256x16xf32> -> vector<256x16xf32>
    %c0_11 = arith.constant 0 : index
    %c0_12 = arith.constant 0 : index
    %16 = vector.load %arg5[%c0_11, %c0_12] : memref<128x16xf32, #tpu.memory_space<vmem>>, vector<128x16xf32>
    %cst_13 = arith.constant dense<0.000000e+00> : vector<256x16xf32>
    %17 = tpu.matmul %13, %16, %cst_13 {dimension_numbers = #tpu.dot_dimension_numbers<[1], [0], [0], [1], [0, 0, 1, 1], [], []>} : vector<256x128xf32>, vector<128x16xf32>, vector<256x16xf32> -> vector<256x16xf32>
    %18 = arith.addf %15, %17 : vector<256x16xf32>
    %c0_14 = arith.constant 0 : index
    %c0_15 = arith.constant 0 : index
    %19 = vector.load %arg6[%c0_14, %c0_15] : memref<1x16xf32, #tpu.memory_space<vmem>>, vector<1x16xf32>
    %20 = vector.broadcast %19 : vector<1x16xf32> to vector<256x16xf32>
    %21 = arith.addf %18, %20 : vector<256x16xf32>
    %c0_16 = arith.constant 0 : index
    %c0_17 = arith.constant 0 : index
    %22 = vector.load %arg7[%c0_16, %c0_17] : memref<256x16xf32, #tpu.memory_space<vmem>>, vector<256x16xf32>
    tpu.vector_store %arg7[%c0_16, %c0_17], %21 {strides = array<i32>} : memref<256x16xf32, #tpu.memory_space<vmem>>, vector<256x16xf32>,
    return
  }
  func.func @transform_0(%arg0: i32) -> (i32, i32) {
    %c0_i32 = arith.constant 0 : i32
    %c0_i32_0 = arith.constant 0 : i32
    return %arg0, %c0_i32 : i32, i32
  }
  func.func @transform_1(%arg0: i32) -> (i32, i32) {
    %c0_i32 = arith.constant 0 : i32
    %c0_i32_0 = arith.constant 0 : i32
    %c0_i32_1 = arith.constant 0 : i32
    return %c0_i32, %c0_i32_0 : i32, i32
  }
  func.func @transform_2(%arg0: i32) -> (i32, i32) {
    %c0_i32 = arith.constant 0 : i32
    %c0_i32_0 = arith.constant 0 : i32
    %c0_i32_1 = arith.constant 0 : i32
    return %c0_i32, %c0_i32_0 : i32, i32
  }
  func.func @transform_3(%arg0: i32) -> (i32, i32) {
    %c0_i32 = arith.constant 0 : i32
    %c0_i32_0 = arith.constant 0 : i32
    %c0_i32_1 = arith.constant 0 : i32
    return %c0_i32, %c0_i32_0 : i32, i32
  }
  func.func @transform_4(%arg0: i32) -> (i32, i32) {
    %c0_i32 = arith.constant 0 : i32
    %c0_i32_0 = arith.constant 0 : i32
    %c0_i32_1 = arith.constant 0 : i32
    return %c0_i32, %c0_i32_0 : i32, i32
  }
  func.func @transform_5(%arg0: i32) -> (i32, i32) {
    %c0_i32 = arith.constant 0 : i32
    %c0_i32_0 = arith.constant 0 : i32
    %c0_i32_1 = arith.constant 0 : i32
    return %c0_i32, %c0_i32_0 : i32, i32
  }
  func.func @transform_6(%arg0: i32) -> (i32, i32) {
    %c0_i32 = arith.constant 0 : i32
    %c0_i32_0 = arith.constant 0 : i32
    return %arg0, %c0_i32 : i32, i32
  }
}

</mosaic_0001>

<bundles_post_ra>
// kernel: tpu_custom_call.1
= control target key start
LH: loop header
LB: loop body
LE: loop exit
PB: predicated region body
PF: predicated region fallthrough
CT: control target
= control target key end

     0   :  { %s2131_s21 = smov 0   ;;  %s2636_s0 = inlined_call_operand.vmem [shape: f32[512,4], index: 0, kind: input, shape index: {}]   ;;  %s2637_s1 = inlined_call_operand.vmem [shape: f32[4,128], index: 1, kind: input, shape index: {}]   ;;  %s2638_s2 = inlined_call_operand.vmem [shape: f32[1,128], index: 2, kind: input, shape index: {}]   ;;  %s2639_s3 = inlined_call_operand.vmem [shape: f32[128,16], index: 3, kind: input, shape index: {}]   ;;  %s2640_s4 = inlined_call_operand.vmem [shape: f32[128,16], index: 4, kind: input, shape index: {}]   ;;  %s2641_s5 = inlined_call_operand.vmem [shape: f32[1,16], index: 5, kind: input, shape index: {}]   ;;  %s2642_s6 = inlined_call_operand.vmem [shape: f32[512,16], index: 6, kind: output, shape index: {}]  }
   0x1 LB: > { %s1455_s22 = sadd.s32 4294967295, %s2094_s21   ;;  %p1459_p0 = scmp.ge.s32.totalorder %s2094_s21, 1  ;;  %s2094_s21 = sphi %s2131_s21, %s16_s21  }
   0x2   : > { %p213_p1 = scmp.lt.s32.totalorder %s2094_s21, 3 }
   0x4   : > { %p214_p2 = pnand %p1459_p0, %p213_p1 }
   0x5   : > { %v287_v0 = vld [vmem:[%s2637_s1] sm:$0xf] (!%p214_p2)  ;;  %vm392_vm0 = vcmask (!%p214_p2), 1043456   ;;  %s1460_s25 = sshll.u32 (!%p214_p2), %s1455_s22, 5  ;;  %vm295_vm1 = vcmask (!%p214_p2), 31744   ;;  %v862_v34 = vld [vmem:[%s2640_s4 + $0x8] sm:$0xff] (!%p214_p2) }
   0x6   : > { %217 = sbr.rel (%p214_p2) target bundleno = 563 (0x233), region = 44  ;;  %1630 = vmatprep.subr.msk.mxu0 (!%p214_p2), %vm392_vm0, %v287_v0  ;;  %p244_p3 = scmp.lt.s32.totalorder (!%p214_p2), %s1460_s25, 63  ;;  %v861_v33 = vld [vmem:[%s2640_s4] sm:$0xff] (!%p214_p2)  ;;  %v846_v37 = vld [vmem:[%s2639_s3 + $0x8] sm:$0xff] (!%p214_p2)  ;;  %v863_v39 = vld [vmem:[%s2640_s4 + $0x10] sm:$0xff] (!%p214_p2)  ;;  %vm1366_vm2 = vcmask (!%p214_p2), 130048  }
   0x7   : > { %1631 = vmatpush3.msk.msra.mxu0 (!%p214_p2), %vm392_vm0, %v287_v0  ;;  %v1840_v35 = vpack.c.bf16 (!%p214_p2), %v862_v34, %v861_v33  ;;  %v845_v36 = vld [vmem:[%s2639_s3] sm:$0xff] (!%p214_p2)  ;;  %v864_v40 = vld [vmem:[%s2640_s4 + $0x18] sm:$0xff] (!%p214_p2)  ;;  %v847_v41 = vld [vmem:[%s2639_s3 + $0x10] sm:$0xff] (!%p214_p2) }
   0x8   : > { %v2228_v38 = vpack.c.bf16 (!%p214_p2), %v846_v37, %v845_v36  ;;  %v1844_v42 = vpack.c.bf16 (!%p214_p2), %v864_v40, %v863_v39  ;;  %v848_v43 = vld [vmem:[%s2639_s3 + $0x18] sm:$0xff] (!%p214_p2)  ;;  %v865_v45 = vld [vmem:[%s2640_s4 + $0x20] sm:$0xff] (!%p214_p2)  ;;  %v866_v46 = vld [vmem:[%s2640_s4 + $0x28] sm:$0xff] (!%p214_p2) }
   0x9   : > { %1841 = vmatprep.subr.bf16.mxu1 (!%p214_p2), %v1840_v35  ;;  %v2244_v44 = vpack.c.bf16 (!%p214_p2), %v848_v43, %v847_v41  ;;  %v849_v47 = vld [vmem:[%s2639_s3 + $0x20] sm:$0xff] (!%p214_p2)  ;;  %v1848_v48 = vpack.c.bf16 (!%p214_p2), %v866_v46, %v865_v45  ;;  %v850_v49 = vld [vmem:[%s2639_s3 + $0x28] sm:$0xff] (!%p214_p2)  ;;  %v867_v51 = vld [vmem:[%s2640_s4 + $0x30] sm:$0xff] (!%p214_p2) }
   0xa   : > { %1843 = vmatpush3.bf16.msra.mxu1 (!%p214_p2), %v1840_v35  ;;  %1873 = vmatprep.subr.bf16.mxu0 (!%p214_p2), %v2228_v38  ;;  %v2260_v50 = vpack.c.bf16 (!%p214_p2), %v850_v49, %v849_v47  ;;  %v868_v52 = vld [vmem:[%s2640_s4 + $0x38] sm:$0xff] (!%p214_p2)  ;;  %v851_v53 = vld [vmem:[%s2639_s3 + $0x30] sm:$0xff] (!%p214_p2)  ;;  %v869_v57 = vld [vmem:[%s2640_s4 + $0x40] sm:$0xff] (!%p214_p2) }
   0xb   : > { %1845 = vmatprep.subr.bf16.mxu1 (!%p214_p2), %v1844_v42  ;;  %v1852_v54 = vpack.c.bf16 (!%p214_p2), %v868_v52, %v867_v51  ;;  %v852_v55 = vld [vmem:[%s2639_s3 + $0x38] sm:$0xff] (!%p214_p2)  ;;  %v870_v58 = vld [vmem:[%s2640_s4 + $0x48] sm:$0xff] (!%p214_p2)  ;;  %v853_v59 = vld [vmem:[%s2639_s3 + $0x40] sm:$0xff] (!%p214_p2) }
   0xc   : > { %v2276_v56 = vpack.c.bf16 (!%p214_p2), %v852_v55, %v851_v53  ;;  %v1856_v60 = vpack.c.bf16 (!%p214_p2), %v870_v58, %v869_v57  ;;  %v854_v61 = vld [vmem:[%s2639_s3 + $0x48] sm:$0xff] (!%p214_p2)  ;;  %v871_v63 = vld [vmem:[%s2640_s4 + $0x50] sm:$0xff] (!%p214_p2)  ;;  %v872_v0 = vld [vmem:[%s2640_s4 + $0x58] sm:$0xff] (!%p214_p2) }
   0xd   : > { %s2644_s25 = smov (!%p244_p3, %s1460_s25), 63  ;;  %v2292_v62 = vpack.c.bf16 %v854_v61, %v853_v59 }
   0xe   : > { %s1461_s26 = sshll.u32 %s2644_s25, 3  ;;  %1847 = vmatpush3.bf16.msra.mxu1 %v1844_v42 }
   0xf   : > { %s2150_s29 = scalar_lea.vmem %s2636_s0, %s1461_s26  ;;  %1849 = vmatprep.subr.bf16.mxu1 %v1848_v48  ;;  %s2535_s13 = scalar_lea.vmem %s2642_s6, %s1461_s26 }
  0x10   : > { %v255_v1 = vld [vmem:[%s2150_s29] sm:$0xff]  ;;  %v256_v2 = vld [vmem:[%s2150_s29 + $0x8] sm:$0xff]  ;;  %v257_v3 = vld [vmem:[%s2150_s29 + $0x10] sm:$0xff] }
  0x11   : > { %1632 = vmatprep.mubr.msk.f32.mxu0 %vm295_vm1, %v255_v1  ;;  %v258_v4 = vld [vmem:[%s2150_s29 + $0x18] sm:$0xff]  ;;  %v259_v5 = vld [vmem:[%s2150_s29 + $0x20] sm:$0xff]  ;;  %v260_v6 = vld [vmem:[%s2150_s29 + $0x28] sm:$0xff] }
  0x12   : > { %1633 = vmatmul.mubr.msk.f32.vlgmr.msra.gmra.mrb[0].mxu0 %vm295_vm1, %v256_v2  ;;  %v261_v7 = vld [vmem:[%s2150_s29 + $0x30] sm:$0xff]  ;;  %v262_v8 = vld [vmem:[%s2150_s29 + $0x38] sm:$0xff]  ;;  %v263_v9 = vld [vmem:[%s2150_s29 + $0x40] sm:$0xff]  ;;  %1851 = vmatpush3.bf16.msra.mxu1 %v1848_v48  ;;  %v1860_v2 = vpack.c.bf16 %v872_v0, %v871_v63 }
  0x13   : > { %1635 = vmatprep.mubr.msk.f32.mxu0 %vm295_vm1, %v257_v3  ;;  %v264_v10 = vld [vmem:[%s2150_s29 + $0x48] sm:$0xff]  ;;  %v265_v11 = vld [vmem:[%s2150_s29 + $0x50] sm:$0xff]  ;;  %v266_v12 = vld [vmem:[%s2150_s29 + $0x58] sm:$0xff]  ;;  %1875 = vmatpush3.bf16.msra.mxu0 %v2228_v38 }
  0x14   : > { %v267_v13 = vld [vmem:[%s2150_s29 + $0x60] sm:$0xff]  ;;  %v268_v14 = vld [vmem:[%s2150_s29 + $0x68] sm:$0xff]  ;;  %v269_v15 = vld [vmem:[%s2150_s29 + $0x70] sm:$0xff]  ;;  %1877 = vmatprep.subr.bf16.mxu0 %v2244_v44  ;;  %1853 = vmatprep.subr.bf16.mxu1 %v1852_v54 }
  0x15   : > { %v270_v16 = vld [vmem:[%s2150_s29 + $0x78] sm:$0xff]  ;;  %v271_v17 = vld [vmem:[%s2150_s29 + $0x80] sm:$0xff]  ;;  %v272_v18 = vld [vmem:[%s2150_s29 + $0x88] sm:$0xff] }
  0x16   : > { %1636 = vmatmul.mubr.msk.f32.gmra.mrb[2].mxu0 %vm295_vm1, %v258_v4  ;;  %v273_v19 = vld [vmem:[%s2150_s29 + $0x90] sm:$0xff]  ;;  %v274_v20 = vld [vmem:[%s2150_s29 + $0x98] sm:$0xff]  ;;  %v275_v21 = vld [vmem:[%s2150_s29 + $0xa0] sm:$0xff]  ;;  %1855 = vmatpush3.bf16.msra.mxu1 %v1852_v54 }
  0x17   : > { %1638 = vmatprep.mubr.msk.f32.mxu0 %vm295_vm1, %v259_v5  ;;  %v276_v22 = vld [vmem:[%s2150_s29 + $0xa8] sm:$0xff]  ;;  %v277_v23 = vld [vmem:[%s2150_s29 + $0xb0] sm:$0xff]  ;;  %v278_v24 = vld [vmem:[%s2150_s29 + $0xb8] sm:$0xff]  ;;  %1879 = vmatpush3.bf16.msra.mxu0 %v2244_v44 }
  0x18   : > { %v279_v25 = vld [vmem:[%s2150_s29 + $0xc0] sm:$0xff]  ;;  %v280_v26 = vld [vmem:[%s2150_s29 + $0xc8] sm:$0xff]  ;;  %v281_v27 = vld [vmem:[%s2150_s29 + $0xd0] sm:$0xff]  ;;  %1881 = vmatprep.subr.bf16.mxu0 %v2260_v50  ;;  %1857 = vmatprep.subr.bf16.mxu1 %v1856_v60 }
  0x19   : > { %v282_v28 = vld [vmem:[%s2150_s29 + $0xd8] sm:$0xff]  ;;  %v283_v29 = vld [vmem:[%s2150_s29 + $0xe0] sm:$0xff]  ;;  %v284_v30 = vld [vmem:[%s2150_s29 + $0xe8] sm:$0xff] }
  0x1a   : > { %1639 = vmatmul.mubr.msk.f32.gmra.mrb[4].mxu0 %vm295_vm1, %v260_v6  ;;  %v285_v31 = vld [vmem:[%s2150_s29 + $0xf0] sm:$0xff]  ;;  %v286_v32 = vld [vmem:[%s2150_s29 + $0xf8] sm:$0xff]  ;;  %1859 = vmatpush3.bf16.msra.mxu1 %v1856_v60  ;;  %v873_v5 = vld [vmem:[%s2640_s4 + $0x60] sm:$0xff] }
  0x1b   : > { %1641 = vmatprep.mubr.msk.f32.mxu0 %vm295_vm1, %v261_v7  ;;  %1883 = vmatpush3.bf16.msra.mxu0 %v2260_v50  ;;  %v855_v1 = vld [vmem:[%s2639_s3 + $0x50] sm:$0xff]  ;;  %v856_v3 = vld [vmem:[%s2639_s3 + $0x58] sm:$0xff]  ;;  %v874_v6 = vld [vmem:[%s2640_s4 + $0x68] sm:$0xff] }
  0x1c   : > { %1885 = vmatprep.subr.bf16.mxu0 %v2276_v56  ;;  %v2308_v4 = vpack.c.bf16 %v856_v3, %v855_v1  ;;  %1861 = vmatprep.subr.bf16.mxu1 %v1860_v2  ;;  %v857_v7 = vld [vmem:[%s2639_s3 + $0x60] sm:$0xff] }
  0x1e   : > { %1642 = vmatmul.mubr.msk.f32.gmra.mrb[6].mxu0 %vm295_vm1, %v262_v8  ;;  %1863 = vmatpush3.bf16.msra.mxu1 %v1860_v2  ;;  %v1864_v8 = vpack.c.bf16 %v874_v6, %v873_v5 }
  0x1f   : > { %1644 = vmatprep.mubr.msk.f32.mxu0 %vm295_vm1, %v263_v9  ;;  %1887 = vmatpush3.bf16.msra.mxu0 %v2276_v56  ;;  %v858_v9 = vld [vmem:[%s2639_s3 + $0x68] sm:$0xff] }
  0x20   : > { %1889 = vmatprep.subr.bf16.mxu0 %v2292_v62  ;;  %1865 = vmatprep.subr.bf16.mxu1 %v1864_v8 }
  0x22   : > { %1645 = vmatmul.mubr.msk.f32.gmra.mrb[8].mxu0 %vm295_vm1, %v264_v10  ;;  %v2324_v10 = vpack.c.bf16 %v858_v9, %v857_v7  ;;  %1867 = vmatpush3.bf16.msra.mxu1 %v1864_v8 }
  0x23   : > { %1647 = vmatprep.mubr.msk.f32.mxu0 %vm295_vm1, %v265_v11  ;;  %1891 = vmatpush3.bf16.msra.mxu0 %v2292_v62  ;;  %v875_v11 = vld [vmem:[%s2640_s4 + $0x70] sm:$0xff] }
  0x24   : > { %1893 = vmatprep.subr.bf16.mxu0 %v2308_v4 }
  0x26   : > { %1648 = vmatmul.mubr.msk.f32.gmra.mrb[10].mxu0 %vm295_vm1, %v266_v12  ;;  %v876_v12 = vld [vmem:[%s2640_s4 + $0x78] sm:$0xff] }
  0x27   : > { %1650 = vmatprep.mubr.msk.f32.mxu0 %vm295_vm1, %v267_v13  ;;  %1895 = vmatpush3.bf16.msra.mxu0 %v2308_v4  ;;  %v859_v13 = vld [vmem:[%s2639_s3 + $0x70] sm:$0xff] }
  0x28   : > { %1897 = vmatprep.subr.bf16.mxu0 %v2324_v10 }
  0x2a   : > { %1651 = vmatmul.mubr.msk.f32.gmra.mrb[12].mxu0 %vm295_vm1, %v268_v14  ;;  %v1868_v14 = vpack.c.bf16 %v876_v12, %v875_v11 }
  0x2b   : > { %1653 = vmatprep.mubr.msk.f32.mxu0 %vm295_vm1, %v269_v15  ;;  %1899 = vmatpush3.bf16.msra.mxu0 %v2324_v10  ;;  %v860_v15 = vld [vmem:[%s2639_s3 + $0x78] sm:$0xff] }
  0x2c   : > { %1869 = vmatprep.subr.bf16.mxu1 %v1868_v14 }
  0x2d   : > { %1871 = vmatpush3.bf16.msra.mxu1 %v1868_v14 }
  0x2e   : > { %1654 = vmatmul.mubr.msk.f32.gmra.mrb[14].mxu0 %vm295_vm1, %v270_v16  ;;  %v2340_v16 = vpack.c.bf16 %v860_v15, %v859_v13  ;;  %1904 = vmatprep.subr.bf16.mxu1 %v2228_v38 }
  0x2f   : > { %1656 = vmatprep.mubr.msk.f32.mxu0 %vm295_vm1, %v271_v17  ;;  %v2348_v17 = vld [vmem:[%s2638_s2] ss:$0 sm:$0xff] }
  0x30   : > { %1901 = vmatprep.subr.bf16.mxu0 %v2340_v16 }
  0x31   : > { %1903 = vmatpush3.bf16.msra.mxu0 %v2340_v16 }
  0x32   : > { %1657 = vmatmul.mubr.msk.f32.gmra.mrb[16].mxu0 %vm295_vm1, %v272_v18 }
  0x33   : > { %1659 = vmatprep.mubr.msk.f32.mxu0 %vm295_vm1, %v273_v19 }
  0x36   : > { %1660 = vmatmul.mubr.msk.f32.gmra.mrb[18].mxu0 %vm295_vm1, %v274_v20 }
  0x37   : > { %1662 = vmatprep.mubr.msk.f32.mxu0 %vm295_vm1, %v275_v21 }
  0x3a   : > { %1663 = vmatmul.mubr.msk.f32.gmra.mrb[20].mxu0 %vm295_vm1, %v276_v22 }
  0x3b   : > { %1665 = vmatprep.mubr.msk.f32.mxu0 %vm295_vm1, %v277_v23 }
  0x3e   : > { %1666 = vmatmul.mubr.msk.f32.gmra.mrb[22].mxu0 %vm295_vm1, %v278_v24 }
  0x3f   : > { %1668 = vmatprep.mubr.msk.f32.mxu0 %vm295_vm1, %v279_v25 }
  0x42   : > { %1669 = vmatmul.mubr.msk.f32.gmra.mrb[24].mxu0 %vm295_vm1, %v280_v26 }
  0x43   : > { %1671 = vmatprep.mubr.msk.f32.mxu0 %vm295_vm1, %v281_v27 }
  0x46   : > { %1672 = vmatmul.mubr.msk.f32.gmra.mrb[26].mxu0 %vm295_vm1, %v282_v28 }
  0x47   : > { %1674 = vmatprep.mubr.msk.f32.mxu0 %vm295_vm1, %v283_v29 }
  0x4a   : > { %1675 = vmatmul.mubr.msk.f32.gmra.mrb[28].mxu0 %vm295_vm1, %v284_v30 }
  0x4b   : > { %1677 = vmatprep.mubr.msk.f32.mxu0 %vm295_vm1, %v285_v31 }
  0x4e   : > { %1678 = vmatmul.mubr.msk.f32.gmra.mrb[30].mxu0 %vm295_vm1, %v286_v32 }
  0xe5   : > { %v1634_v18 = vpop.f32.mrb[0].mxu0 }
  0xe6   : > { %v2351_v19 = vadd.f32 %v1634_v18, %v2348_v17  ;;  %v462_v20 = vpop.f32.mrb[1].mxu0 }
  0xe7   : > { %v2354_v21 = vadd.f32 %v2348_v17, %v462_v20 }
  0xe8   : > { %v622_v22 = vsub.f32 0.0, %v2351_v19 }
  0xe9   : > { %v621_v23 = vsub.f32 0.0, %v2354_v21  ;;  %v1637_v24 = vpop.f32.mrb[2].mxu0 }
  0xea   : > { %v655_v25 = vmul.f32 1.442695, %v622_v22  ;;  %v2359_v26 = vadd.f32 %v1637_v24, %v2348_v17  ;;  %v472_v27 = vpop.f32.mrb[3].mxu0 }
  0xeb   : > { %v653_v28 = vmul.f32 1.442695, %v621_v23  ;;  %v2362_v29 = vadd.f32 %v2348_v17, %v472_v27 }
  0xec   : > { %1960 = vpow2.f32 %v655_v25  ;;  %v624_v30 = vsub.f32 0.0, %v2359_v26 }
  0xed   : > { %1962 = vpow2.f32 %v653_v28  ;;  %v623_v31 = vsub.f32 0.0, %v2362_v29  ;;  %v1640_v32 = vpop.f32.mrb[4].mxu0 }
  0xee   : > { %v659_v33 = vmul.f32 1.442695, %v624_v30  ;;  %v2367_v34 = vadd.f32 %v1640_v32, %v2348_v17  ;;  %v482_v35 = vpop.f32.mrb[5].mxu0 }
  0xef   : > { %v657_v36 = vmul.f32 1.442695, %v623_v31  ;;  %v2370_v37 = vadd.f32 %v2348_v17, %v482_v35 }
  0xf0   : > { %1964 = vpow2.f32 %v659_v33  ;;  %v626_v39 = vsub.f32 0.0, %v2367_v34 }
  0xf1   : > { %1966 = vpow2.f32 %v657_v36  ;;  %v625_v40 = vsub.f32 0.0, %v2370_v37  ;;  %v1643_v41 = vpop.f32.mrb[6].mxu0 }
  0xf2   : > { %v663_v42 = vmul.f32 1.442695, %v626_v39  ;;  %v2375_v43 = vadd.f32 %v1643_v41, %v2348_v17  ;;  %v492_v45 = vpop.f32.mrb[7].mxu0 }
  0xf3   : > { %v661_v46 = vmul.f32 1.442695, %v625_v40  ;;  %v2378_v47 = vadd.f32 %v2348_v17, %v492_v45 }
  0xf4   : > { %1968 = vpow2.f32 %v663_v42  ;;  %v628_v48 = vsub.f32 0.0, %v2375_v43 }
  0xf5   : > { %1970 = vpow2.f32 %v661_v46  ;;  %v627_v49 = vsub.f32 0.0, %v2378_v47  ;;  %v1646_v51 = vpop.f32.mrb[8].mxu0 }
  0xf6   : > { %v1961_v52 = vpop.eup %1960  ;;  %v667_v53 = vmul.f32 1.442695, %v628_v48  ;;  %v2383_v54 = vadd.f32 %v1646_v51, %v2348_v17  ;;  %v502_v55 = vpop.f32.mrb[9].mxu0 }
  0xf7   : > { %v1963_v57 = vpop.eup %1962  ;;  %v718_v58 = vadd.f32 1.0, %v1961_v52  ;;  %v665_v59 = vmul.f32 1.442695, %v627_v49  ;;  %v2386_v60 = vadd.f32 %v2348_v17, %v502_v55 }
  0xf8   : > { %v717_v61 = vadd.f32 1.0, %v1963_v57  ;;  %1972 = vpow2.f32 %v667_v53  ;;  %v630_v63 = vsub.f32 0.0, %v2383_v54 }
  0xf9   : > { %1974 = vrcp.f32 %v718_v58  ;;  %v629_v0 = vsub.f32 0.0, %v2386_v60  ;;  %v1649_v1 = vpop.f32.mrb[10].mxu0 }
  0xfa   : > { %v1965_v2 = vpop.eup %1964  ;;  %1976 = vrcp.f32 %v717_v61  ;;  %v671_v3 = vmul.f32 1.442695, %v630_v63  ;;  %v2391_v5 = vadd.f32 %v1649_v1, %v2348_v17  ;;  %v512_v6 = vpop.f32.mrb[11].mxu0 }
  0xfb   : > { %v1967_v7 = vpop.eup %1966  ;;  %v720_v8 = vadd.f32 1.0, %v1965_v2  ;;  %1978 = vpow2.f32 %v665_v59  ;;  %v669_v9 = vmul.f32 1.442695, %v629_v0  ;;  %v2394_v11 = vadd.f32 %v2348_v17, %v512_v6 }
  0xfc   : > { %v719_v12 = vadd.f32 1.0, %v1967_v7  ;;  %1980 = vpow2.f32 %v671_v3  ;;  %v632_v13 = vsub.f32 0.0, %v2391_v5 }
  0xfd   : > { %1982 = vrcp.f32 %v720_v8  ;;  %v631_v14 = vsub.f32 0.0, %v2394_v11  ;;  %v1652_v15 = vpop.f32.mrb[12].mxu0 }
  0xfe   : > { %v1969_v18 = vpop.eup %1968  ;;  %1984 = vrcp.f32 %v719_v12  ;;  %v675_v20 = vmul.f32 1.442695, %v632_v13  ;;  %v2399_v22 = vadd.f32 %v1652_v15, %v2348_v17  ;;  %v522_v23 = vpop.f32.mrb[13].mxu0 }
  0xff   : > { %v1971_v24 = vpop.eup %1970  ;;  %v722_v25 = vadd.f32 1.0, %v1969_v18  ;;  %1986 = vpow2.f32 %v669_v9  ;;  %v673_v27 = vmul.f32 1.442695, %v631_v14  ;;  %v2402_v28 = vadd.f32 %v2348_v17, %v522_v23 }
 0x100   : > { %v721_v30 = vadd.f32 1.0, %v1971_v24  ;;  %1988 = vpow2.f32 %v675_v20  ;;  %v634_v31 = vsub.f32 0.0, %v2399_v22 }
 0x101   : > { %1990 = vrcp.f32 %v722_v25  ;;  %v633_v32 = vsub.f32 0.0, %v2402_v28  ;;  %v1655_v33 = vpop.f32.mrb[14].mxu0 }
 0x102   : > { %v1973_v35 = vpop.eup %1972  ;;  %1992 = vrcp.f32 %v721_v30  ;;  %v679_v36 = vmul.f32 1.442695, %v634_v31  ;;  %v2407_v39 = vadd.f32 %v1655_v33, %v2348_v17  ;;  %v532_v40 = vpop.f32.mrb[15].mxu0 }
 0x103   : > { %v1975_v41 = vpop.eup %1974  ;;  %v724_v42 = vadd.f32 1.0, %v1973_v35  ;;  %1994 = vpow2.f32 %v673_v27  ;;  %v677_v45 = vmul.f32 1.442695, %v633_v32  ;;  %v2410_v46 = vadd.f32 %v2348_v17, %v532_v40 }
 0x104   : > { %v1977_v48 = vpop.eup %1976  ;;  %1996 = vpow2.f32 %v679_v36  ;;  %v636_v49 = vsub.f32 0.0, %v2407_v39  ;;  %v814_v52 = vmul.f32 %v1975_v41, %v2351_v19 }
 0x105   : > { %v1979_v51 = vpop.eup %1978  ;;  %v635_v53 = vsub.f32 0.0, %v2410_v46  ;;  %v1658_v55 = vpop.f32.mrb[16].mxu0  ;;  %v813_v57 = vmul.f32 %v1977_v48, %v2354_v21  ;;  %1998 = vpow2.f32 %v677_v45 }
 0x106   : > { %v1981_v58 = vpop.eup %1980  ;;  %v723_v59 = vadd.f32 1.0, %v1979_v51  ;;  %v683_v61 = vmul.f32 1.442695, %v636_v49  ;;  %v2417_v63 = vadd.f32 %v1658_v55, %v2348_v17  ;;  %v542_v0 = vpop.f32.mrb[17].mxu0  ;;  %2000 = vrcp.f32 %v724_v42 }
 0x107   : > { %v1983_v1 = vpop.eup %1982  ;;  %v726_v2 = vadd.f32 1.0, %v1981_v58  ;;  %v681_v3 = vmul.f32 1.442695, %v635_v53  ;;  %v2420_v6 = vadd.f32 %v2348_v17, %v542_v0  ;;  %1712 = vmatprep.mubr.f32.mxu1 %v813_v57  ;;  %1792 = vmatprep.mubr.f32.mxu0 %v813_v57 }
 0x108   : > { %v1985_v19 = vpop.eup %1984  ;;  %2002 = vrcp.f32 %v723_v59  ;;  %v638_v21 = vsub.f32 0.0, %v2417_v63  ;;  %1713 = vmatmul.mubr.f32.vlgmr.msra.gmra.mrb[0].mxu1 %v814_v52  ;;  %1793 = vmatmul.mubr.f32.vlgmr.msra.gmra.mrb[32].mxu0 %v814_v52  ;;  %v816_v8 = vmul.f32 %v1983_v1, %v2359_v26 }
 0x109   : > { %v1987_v7 = vpop.eup %1986  ;;  %v815_v9 = vmul.f32 %v1985_v19, %v2362_v29  ;;  %2004 = vrcp.f32 %v726_v2  ;;  %v637_v12 = vsub.f32 0.0, %v2420_v6  ;;  %1912 = vmatpush3.bf16.msra.mxu1 %v2228_v38  ;;  %v1661_v13 = vpop.f32.mrb[18].mxu0 }
 0x10a   : > { %v1989_v14 = vpop.eup %1988  ;;  %v725_v15 = vadd.f32 1.0, %v1987_v7  ;;  %2006 = vpow2.f32 %v683_v61  ;;  %v687_v18 = vmul.f32 1.442695, %v638_v21  ;;  %v2428_v20 = vadd.f32 %v1661_v13, %v2348_v17  ;;  %v552_v23 = vpop.f32.mrb[19].mxu0  ;;  %1905 = vmatprep.subr.bf16.mxu1 %v2244_v44 }
 0x10b   : > { %v1991_v24 = vpop.eup %1990  ;;  %v728_v26 = vadd.f32 1.0, %v1989_v14  ;;  %2008 = vpow2.f32 %v681_v3  ;;  %v685_v29 = vmul.f32 1.442695, %v637_v12  ;;  %v2432_v25 = vadd.f32 %v2348_v17, %v552_v23  ;;  %1715 = vmatprep.mubr.f32.mxu1 %v815_v9  ;;  %1795 = vmatprep.mubr.f32.mxu0 %v815_v9 }
 0x10c   : > { %v1993_v38 = vpop.eup %1992  ;;  %2010 = vrcp.f32 %v725_v15  ;;  %v640_v27 = vsub.f32 0.0, %v2428_v20  ;;  %1716 = vmatmul.mubr.f32.gmra.mrb[2].mxu1 %v816_v8  ;;  %1796 = vmatmul.mubr.f32.gmra.mrb[34].mxu0 %v816_v8  ;;  %v818_v31 = vmul.f32 %v1991_v24, %v2367_v34 }
 0x10d   : > { %v1995_v30 = vpop.eup %1994  ;;  %v817_v32 = vmul.f32 %v1993_v38, %v2370_v37  ;;  %2012 = vrcp.f32 %v728_v26  ;;  %v639_v33 = vsub.f32 0.0, %v2432_v25  ;;  %v1664_v35 = vpop.f32.mrb[20].mxu0  ;;  %1913 = vmatpush3.bf16.msra.mxu1 %v2244_v44 }
 0x10e   : > { %v1997_v36 = vpop.eup %1996  ;;  %v727_v40 = vadd.f32 1.0, %v1995_v30  ;;  %2014 = vpow2.f32 %v687_v18  ;;  %v691_v41 = vmul.f32 1.442695, %v640_v27  ;;  %v2440_v42 = vadd.f32 %v1664_v35, %v2348_v17  ;;  %v562_v45 = vpop.f32.mrb[21].mxu0  ;;  %1906 = vmatprep.subr.bf16.mxu1 %v2260_v50 }
 0x10f   : > { %v730_v48 = vadd.f32 1.0, %v1997_v36  ;;  %2016 = vpow2.f32 %v685_v29  ;;  %v2444_v34 = vadd.f32 %v2348_v17, %v562_v45  ;;  %1718 = vmatprep.mubr.f32.mxu1 %v817_v32  ;;  %1798 = vmatprep.mubr.f32.mxu0 %v817_v32  ;;  %v1999_v37 = vpop.eup %1998  ;;  %v689_v44 = vmul.f32 1.442695, %v639_v33 }
 0x110   : > { %2018 = vrcp.f32 %v727_v40  ;;  %v642_v49 = vsub.f32 0.0, %v2440_v42  ;;  %1719 = vmatmul.mubr.f32.gmra.mrb[4].mxu1 %v818_v31  ;;  %1799 = vmatmul.mubr.f32.gmra.mrb[36].mxu0 %v818_v31  ;;  %v2001_v51 = vpop.eup %2000  ;;  %v729_v52 = vadd.f32 1.0, %v1999_v37 }
 0x111   : > { %2020 = vrcp.f32 %v730_v48  ;;  %v641_v53 = vsub.f32 0.0, %v2444_v34  ;;  %v1667_v55 = vpop.f32.mrb[22].mxu0  ;;  %1914 = vmatpush3.bf16.msra.mxu1 %v2260_v50  ;;  %v820_v50 = vmul.f32 %v2001_v51, %v2375_v43 }
 0x112   : > { %v2003_v57 = vpop.eup %2002  ;;  %2022 = vpow2.f32 %v691_v41  ;;  %v695_v58 = vmul.f32 1.442695, %v642_v49  ;;  %v2450_v59 = vadd.f32 %v1667_v55, %v2348_v17  ;;  %v572_v61 = vpop.f32.mrb[23].mxu0  ;;  %1907 = vmatprep.subr.bf16.mxu1 %v2276_v56 }
 0x113   : > { %v2005_v0 = vpop.eup %2004  ;;  %v819_v1 = vmul.f32 %v2003_v57, %v2378_v47  ;;  %2024 = vrcp.f32 %v729_v52  ;;  %v693_v2 = vmul.f32 1.442695, %v641_v53  ;;  %v2455_v3 = vadd.f32 %v2348_v17, %v572_v61 }
 0x114   : > { %v2007_v19 = vpop.eup %2006  ;;  %2026 = vpow2.f32 %v689_v44  ;;  %v644_v21 = vsub.f32 0.0, %v2450_v59  ;;  %v822_v38 = vmul.f32 %v2005_v0, %v2383_v54 }
 0x115   : > { %v2009_v7 = vpop.eup %2008  ;;  %v732_v8 = vadd.f32 1.0, %v2007_v19  ;;  %2028 = vpow2.f32 %v695_v58  ;;  %v643_v9 = vsub.f32 0.0, %v2455_v3  ;;  %1721 = vmatprep.mubr.f32.mxu1 %v819_v1  ;;  %1801 = vmatprep.mubr.f32.mxu0 %v819_v1  ;;  %v1670_v12 = vpop.f32.mrb[24].mxu0 }
 0x116   : > { %v2011_v47 = vpop.eup %2010  ;;  %v731_v13 = vadd.f32 1.0, %v2009_v7  ;;  %2030 = vpow2.f32 %v693_v2  ;;  %v699_v14 = vmul.f32 1.442695, %v644_v21  ;;  %1722 = vmatmul.mubr.f32.gmra.mrb[6].mxu1 %v820_v50  ;;  %1802 = vmatmul.mubr.f32.gmra.mrb[38].mxu0 %v820_v50  ;;  %v2461_v15 = vadd.f32 %v1670_v12, %v2348_v17  ;;  %v582_v43 = vpop.f32.mrb[25].mxu0 }
 0x117   : > { %v2013_v18 = vpop.eup %2012  ;;  %v821_v23 = vmul.f32 %v2011_v47, %v2386_v60  ;;  %2032 = vrcp.f32 %v732_v8  ;;  %v697_v24 = vmul.f32 1.442695, %v643_v9  ;;  %v2465_v26 = vadd.f32 %v2348_v17, %v582_v43  ;;  %1915 = vmatpush3.bf16.msra.mxu1 %v2276_v56 }
 0x118   : > { %v2015_v29 = vpop.eup %2014  ;;  %2034 = vrcp.f32 %v731_v13  ;;  %v646_v27 = vsub.f32 0.0, %v2461_v15  ;;  %1908 = vmatprep.subr.bf16.mxu1 %v2292_v62  ;;  %v824_v44 = vmul.f32 %v2013_v18, %v2391_v5 }
 0x119   : > { %v2017_v30 = vpop.eup %2016  ;;  %v734_v31 = vadd.f32 1.0, %v2015_v29  ;;  %2036 = vpow2.f32 %v699_v14  ;;  %v645_v60 = vsub.f32 0.0, %v2465_v26  ;;  %1724 = vmatprep.mubr.f32.mxu1 %v821_v23  ;;  %1804 = vmatprep.mubr.f32.mxu0 %v821_v23  ;;  %v1673_v32 = vpop.f32.mrb[26].mxu0 }
 0x11a   : > { %v2019_v33 = vpop.eup %2018  ;;  %v733_v35 = vadd.f32 1.0, %v2017_v30  ;;  %2038 = vpow2.f32 %v697_v24  ;;  %v703_v56 = vmul.f32 1.442695, %v646_v27  ;;  %1725 = vmatmul.mubr.f32.gmra.mrb[8].mxu1 %v822_v38  ;;  %1805 = vmatmul.mubr.f32.gmra.mrb[40].mxu0 %v822_v38  ;;  %v2473_v54 = vadd.f32 %v1673_v32, %v2348_v17  ;;  %v592_v36 = vpop.f32.mrb[27].mxu0 }
 0x11b   : > { %v2021_v40 = vpop.eup %2020  ;;  %v823_v41 = vmul.f32 %v2019_v33, %v2394_v11  ;;  %2040 = vrcp.f32 %v734_v31  ;;  %v701_v45 = vmul.f32 1.442695, %v645_v60  ;;  %v2477_v48 = vadd.f32 %v2348_v17, %v592_v36  ;;  %1916 = vmatpush3.bf16.msra.mxu1 %v2292_v62 }
 0x11c   : > { %v2023_v37 = vpop.eup %2022  ;;  %2042 = vrcp.f32 %v733_v35  ;;  %v648_v49 = vsub.f32 0.0, %v2473_v54  ;;  %1909 = vmatprep.subr.bf16.mxu1 %v2308_v4  ;;  %v826_v0 = vmul.f32 %v2021_v40, %v2399_v22 }
 0x11d   : > { %v2025_v51 = vpop.eup %2024  ;;  %v736_v52 = vadd.f32 1.0, %v2023_v37  ;;  %2044 = vpow2.f32 %v703_v56  ;;  %v647_v11 = vsub.f32 0.0, %v2477_v48  ;;  %1727 = vmatprep.mubr.f32.mxu1 %v823_v41  ;;  %1807 = vmatprep.mubr.f32.mxu0 %v823_v41  ;;  %v1676_v53 = vpop.f32.mrb[28].mxu0 }
 0x11e   : > { %v2027_v55 = vpop.eup %2026  ;;  %v825_v57 = vmul.f32 %v2025_v51, %v2402_v28  ;;  %2046 = vpow2.f32 %v701_v45  ;;  %v707_v62 = vmul.f32 1.442695, %v648_v49  ;;  %1728 = vmatmul.mubr.f32.gmra.mrb[10].mxu1 %v824_v44  ;;  %1808 = vmatmul.mubr.f32.gmra.mrb[42].mxu0 %v824_v44  ;;  %v2486_v5 = vadd.f32 %v1676_v53, %v2348_v17  ;;  %v602_v58 = vpop.f32.mrb[29].mxu0 }
 0x11f   : > { %v2029_v61 = vpop.eup %2028  ;;  %2048 = vrcp.f32 %v736_v52  ;;  %v735_v1 = vadd.f32 1.0, %v2027_v55  ;;  %v2490_v2 = vadd.f32 %v2348_v17, %v602_v58  ;;  %1917 = vmatpush3.bf16.msra.mxu1 %v2308_v4  ;;  %v705_v50 = vmul.f32 1.442695, %v647_v11 }
 0x120   : > { %v2031_v19 = vpop.eup %2030  ;;  %v738_v28 = vadd.f32 1.0, %v2029_v61  ;;  %2050 = vpow2.f32 %v707_v62  ;;  %v650_v21 = vsub.f32 0.0, %v2486_v5  ;;  %1730 = vmatprep.mubr.f32.mxu1 %v825_v57  ;;  %1810 = vmatprep.mubr.f32.mxu0 %v825_v57 }
 0x121   : > { %v2033_v7 = vpop.eup %2032  ;;  %2052 = vrcp.f32 %v735_v1  ;;  %v737_v8 = vadd.f32 1.0, %v2031_v19  ;;  %v649_v22 = vsub.f32 0.0, %v2490_v2  ;;  %v1679_v9 = vpop.f32.mrb[30].mxu0  ;;  %1910 = vmatprep.subr.bf16.mxu1 %v2324_v10 }
 0x122   : > { %v2035_v12 = vpop.eup %2034  ;;  %2054 = vrcp.f32 %v738_v28  ;;  %v711_v47 = vmul.f32 1.442695, %v650_v21  ;;  %1731 = vmatmul.mubr.f32.gmra.mrb[12].mxu1 %v826_v0  ;;  %1811 = vmatmul.mubr.f32.gmra.mrb[44].mxu0 %v826_v0  ;;  %v2497_v4 = vadd.f32 %v1679_v9, %v2348_v17  ;;  %v612_v13 = vpop.f32.mrb[31].mxu0  ;;  %v828_v43 = vmul.f32 %v2033_v7, %v2407_v39 }
 0x123   : > { %v2037_v14 = vpop.eup %2036  ;;  %v827_v18 = vmul.f32 %v2035_v12, %v2410_v46  ;;  %2056 = vrcp.f32 %v737_v8  ;;  %v2502_v23 = vadd.f32 %v2348_v17, %v612_v13  ;;  %1918 = vmatpush3.bf16.msra.mxu1 %v2324_v10  ;;  %v709_v38 = vmul.f32 1.442695, %v649_v22 }
 0x124   : > { %v2039_v24 = vpop.eup %2038  ;;  %v740_v29 = vadd.f32 1.0, %v2037_v14  ;;  %2058 = vpow2.f32 %v705_v50  ;;  %v652_v27 = vsub.f32 0.0, %v2497_v4  ;;  %1911 = vmatprep.subr.bf16.mxu1 %v2340_v16 }
 0x125   : > { %v2041_v30 = vpop.eup %2040  ;;  %v739_v31 = vadd.f32 1.0, %v2039_v24  ;;  %2060 = vpow2.f32 %v711_v47  ;;  %v651_v39 = vsub.f32 0.0, %v2502_v23  ;;  %1733 = vmatprep.mubr.f32.mxu1 %v827_v18  ;;  %1813 = vmatprep.mubr.f32.mxu0 %v827_v18 }
 0x126   : > { %v2043_v46 = vpop.eup %2042  ;;  %2062 = vrcp.f32 %v740_v29  ;;  %v715_v17 = vmul.f32 1.442695, %v652_v27  ;;  %1734 = vmatmul.mubr.f32.gmra.mrb[14].mxu1 %v828_v43  ;;  %1814 = vmatmul.mubr.f32.gmra.mrb[46].mxu0 %v828_v43  ;;  %v830_v33 = vmul.f32 %v2041_v30, %v2417_v63 }
 0x127   : > { %v2045_v10 = vpop.eup %2044  ;;  %v829_v60 = vmul.f32 %v2043_v46, %v2420_v6  ;;  %2064 = vrcp.f32 %v739_v31  ;;  %1919 = vmatpush3.bf16.msra.mxu1 %v2340_v16  ;;  %v713_v56 = vmul.f32 1.442695, %v651_v39 }
 0x128   : > { %v2047_v32 = vpop.eup %2046  ;;  %v742_v35 = vadd.f32 1.0, %v2045_v10  ;;  %2066 = vpow2.f32 %v709_v38 }
 0x129   : > { %v2049_v36 = vpop.eup %2048  ;;  %v741_v40 = vadd.f32 1.0, %v2047_v32  ;;  %2068 = vpow2.f32 %v715_v17  ;;  %1736 = vmatprep.mubr.f32.mxu1 %v829_v60  ;;  %1816 = vmatprep.mubr.f32.mxu0 %v829_v60 }
 0x12a   : > { %v2051_v41 = vpop.eup %2050  ;;  %2070 = vrcp.f32 %v742_v35  ;;  %1737 = vmatmul.mubr.f32.gmra.mrb[16].mxu1 %v830_v33  ;;  %1817 = vmatmul.mubr.f32.gmra.mrb[48].mxu0 %v830_v33  ;;  %v832_v44 = vmul.f32 %v2049_v36, %v2428_v20 }
 0x12b   : > { %v2053_v45 = vpop.eup %2052  ;;  %2072 = vrcp.f32 %v741_v40  ;;  %v744_v37 = vadd.f32 1.0, %v2051_v41 }
 0x12c   : > { %v2055_v6 = vpop.eup %2054  ;;  %v831_v16 = vmul.f32 %v2053_v45, %v2432_v25  ;;  %2074 = vpow2.f32 %v713_v56 }
 0x12d   : > { %v2057_v63 = vpop.eup %2056  ;;  %2076 = vrcp.f32 %v744_v37  ;;  %v834_v57 = vmul.f32 %v2055_v6, %v2440_v42 }
 0x12e   : > { %v2059_v49 = vpop.eup %2058  ;;  %v833_v51 = vmul.f32 %v2057_v63, %v2444_v34  ;;  %1739 = vmatprep.mubr.f32.mxu1 %v831_v16  ;;  %1819 = vmatprep.mubr.f32.mxu0 %v831_v16 }
 0x12f   : > { %v2061_v52 = vpop.eup %2060  ;;  %v743_v11 = vadd.f32 1.0, %v2059_v49  ;;  %1740 = vmatmul.mubr.f32.gmra.mrb[18].mxu1 %v832_v44  ;;  %1820 = vmatmul.mubr.f32.gmra.mrb[50].mxu0 %v832_v44 }
 0x130   : > { %v2063_v53 = vpop.eup %2062  ;;  %v746_v55 = vadd.f32 1.0, %v2061_v52  ;;  %1742 = vmatprep.mubr.f32.mxu1 %v833_v51  ;;  %1822 = vmatprep.mubr.f32.mxu0 %v833_v51 }
 0x131   : > { %v2065_v25 = vpop.eup %2064  ;;  %2078 = vrcp.f32 %v743_v11  ;;  %v836_v19 = vmul.f32 %v2063_v53, %v2450_v59 }
 0x132   : > { %v2067_v62 = vpop.eup %2066  ;;  %v835_v20 = vmul.f32 %v2065_v25, %v2455_v3  ;;  %2080 = vrcp.f32 %v746_v55 }
 0x133   : > { %v2069_v58 = vpop.eup %2068  ;;  %v745_v34 = vadd.f32 1.0, %v2067_v62  ;;  %1743 = vmatmul.mubr.f32.gmra.mrb[20].mxu1 %v834_v57  ;;  %1823 = vmatmul.mubr.f32.gmra.mrb[52].mxu0 %v834_v57 }
 0x134   : > { %v2071_v61 = vpop.eup %2070  ;;  %v748_v0 = vadd.f32 1.0, %v2069_v58  ;;  %1745 = vmatprep.mubr.f32.mxu1 %v835_v20 }
 0x135   : > { %v2073_v1 = vpop.eup %2072  ;;  %2082 = vrcp.f32 %v745_v34  ;;  %v838_v3 = vmul.f32 %v2071_v61, %v2461_v15 }
 0x136   : > { %v2075_v28 = vpop.eup %2074  ;;  %v837_v50 = vmul.f32 %v2073_v1, %v2465_v26  ;;  %2084 = vrcp.f32 %v748_v0 }
 0x137   : > { %v747_v42 = vadd.f32 1.0, %v2075_v28  ;;  %1746 = vmatmul.mubr.f32.gmra.mrb[22].mxu1 %v836_v19  ;;  %v2077_v21 = vpop.eup %2076 }
 0x138   : > { %1748 = vmatprep.mubr.f32.mxu1 %v837_v50  ;;  %v840_v22 = vmul.f32 %v2077_v21, %v2473_v54 }
 0x139   : > { %2086 = vrcp.f32 %v747_v42 }
 0x13b   : > { %v2079_v7 = vpop.eup %2078  ;;  %1749 = vmatmul.mubr.f32.gmra.mrb[24].mxu1 %v838_v3 }
 0x13c   : > { %v839_v8 = vmul.f32 %v2079_v7, %v2477_v48  ;;  %v2081_v9 = vpop.eup %2080 }
 0x13d   : > { %v842_v12 = vmul.f32 %v2081_v9, %v2486_v5  ;;  %v2528_v5 = vld [vmem:[%s2641_s5] ss:$0 sm:$0xff] }
 0x13e   : > { %1751 = vmatprep.mubr.f32.mxu1 %v839_v8 }
 0x13f   : > { %v2083_v59 = vpop.eup %2082  ;;  %1752 = vmatmul.mubr.f32.gmra.mrb[26].mxu1 %v840_v22 }
 0x140   : > { %v841_v26 = vmul.f32 %v2083_v59, %v2490_v2  ;;  %v2085_v47 = vpop.eup %2084 }
 0x141   : > { %v844_v14 = vmul.f32 %v2085_v47, %v2497_v4 }
 0x142   : > { %1754 = vmatprep.mubr.f32.mxu1 %v841_v26 }
 0x143   : > { %v2087_v13 = vpop.eup %2086  ;;  %1755 = vmatmul.mubr.f32.gmra.mrb[28].mxu1 %v842_v12 }
 0x144   : > { %v843_v15 = vmul.f32 %v2087_v13, %v2502_v23 }
 0x146   : > { %1757 = vmatprep.mubr.f32.mxu1 %v843_v15 }
 0x147   : > { %1758 = vmatmul.mubr.f32.gmra.mrb[30].mxu1 %v844_v14 }
 0x148   : > { %1825 = vmatprep.mubr.f32.mxu1 %v835_v20 }
 0x14b   : > { %1826 = vmatmul.mubr.f32.vlgmr.msra.gmra.mrb[22].mxu1 %v836_v19 }
 0x14c   : > { %1828 = vmatprep.mubr.f32.mxu1 %v837_v50 }
 0x14f   : > { %1829 = vmatmul.mubr.f32.gmra.mrb[24].mxu1 %v838_v3 }
 0x150   : > { %1831 = vmatprep.mubr.f32.mxu1 %v839_v8 }
 0x153   : > { %1832 = vmatmul.mubr.f32.gmra.mrb[26].mxu1 %v840_v22 }
 0x154   : > { %1834 = vmatprep.mubr.f32.mxu1 %v841_v26 }
 0x157   : > { %1835 = vmatmul.mubr.f32.gmra.mrb[28].mxu1 %v842_v12 }
 0x158   : > { %1837 = vmatprep.mubr.f32.mxu1 %v843_v15 }
 0x15b   : > { %1838 = vmatmul.mubr.f32.gmra.mrb[30].mxu1 %v844_v14 }
 0x1db   : > { %v1714_v54 = vpop.f32.mrb[0].mxu1  ;;  %v1794_v48 = vpop.f32.mrb[32].mxu0 }
 0x1dc   : > { %v1174_v2 = vadd.f32 %v1794_v48, %v1714_v54  ;;  %v943_v4 = vpop.f32.mrb[1].mxu1  ;;  %v1168_v43 = vpop.f32.mrb[33].mxu0 }
 0x1dd   : > { %v1169_v18 = vadd.f32 %v1168_v43, %v943_v4 }
 0x1de   : > { %v1335_v23 = vadd.f32 %v2528_v5, %v1174_v2 }
 0x1df   : > { %v1334_v24 = vadd.f32 %v2528_v5, %v1169_v18  ;;  %v1717_v29 = vpop.f32.mrb[2].mxu1  ;;  %v1797_v38 = vpop.f32.mrb[34].mxu0 }
 0x1e0   : > { %1368 = vst.msk [vmem:[%s2535_s13 + $0x8] sm:$0xff] %vm1366_vm2, %v1335_v23  ;;  %v1184_v27 = vadd.f32 %v1797_v38, %v1717_v29  ;;  %v953_v30 = vpop.f32.mrb[3].mxu1  ;;  %v1178_v31 = vpop.f32.mrb[35].mxu0 }
 0x1e1   : > { %1367 = vst.msk [vmem:[%s2535_s13] sm:$0xff] %vm1366_vm2, %v1334_v24  ;;  %v1179_v39 = vadd.f32 %v1178_v31, %v953_v30 }
 0x1e2   : > { %v1337_v46 = vadd.f32 %v2528_v5, %v1184_v27 }
 0x1e3   : > { %v1336_v17 = vadd.f32 %v2528_v5, %v1179_v39  ;;  %v1720_v10 = vpop.f32.mrb[4].mxu1  ;;  %v1800_v60 = vpop.f32.mrb[36].mxu0 }
 0x1e4   : > { %1370 = vst.msk [vmem:[%s2535_s13 + $0x18] sm:$0xff] %vm1366_vm2, %v1337_v46  ;;  %v1194_v32 = vadd.f32 %v1800_v60, %v1720_v10  ;;  %v963_v33 = vpop.f32.mrb[5].mxu1  ;;  %v1188_v35 = vpop.f32.mrb[37].mxu0 }
 0x1e5   : > { %1369 = vst.msk [vmem:[%s2535_s13 + $0x10] sm:$0xff] %vm1366_vm2, %v1336_v17  ;;  %v1189_v56 = vadd.f32 %v1188_v35, %v963_v33 }
 0x1e6   : > { %v1339_v36 = vadd.f32 %v2528_v5, %v1194_v32 }
 0x1e7   : > { %v1338_v40 = vadd.f32 %v2528_v5, %v1189_v56 }
 0x1e8   : > { %1372 = vst.msk [vmem:[%s2535_s13 + $0x28] sm:$0xff] %vm1366_vm2, %v1339_v36 }
 0x1e9   : > { %1371 = vst.msk [vmem:[%s2535_s13 + $0x20] sm:$0xff] %vm1366_vm2, %v1338_v40  ;;  %v1723_v41 = vpop.f32.mrb[6].mxu1  ;;  %v1803_v45 = vpop.f32.mrb[38].mxu0 }
 0x1ea   : > { %v1204_v6 = vadd.f32 %v1803_v45, %v1723_v41  ;;  %v973_v16 = vpop.f32.mrb[7].mxu1  ;;  %v1198_v37 = vpop.f32.mrb[39].mxu0 }
 0x1eb   : > { %v1199_v63 = vadd.f32 %v1198_v37, %v973_v16 }
 0x1ec   : > { %v1341_v44 = vadd.f32 %v2528_v5, %v1204_v6 }
 0x1ed   : > { %v1340_v49 = vadd.f32 %v2528_v5, %v1199_v63  ;;  %v1726_v51 = vpop.f32.mrb[8].mxu1  ;;  %v1806_v52 = vpop.f32.mrb[40].mxu0 }
 0x1ee   : > { %1374 = vst.msk [vmem:[%s2535_s13 + $0x38] sm:$0xff] %vm1366_vm2, %v1341_v44  ;;  %v1214_v11 = vadd.f32 %v1806_v52, %v1726_v51  ;;  %v983_v53 = vpop.f32.mrb[9].mxu1  ;;  %v1208_v55 = vpop.f32.mrb[41].mxu0 }
 0x1ef   : > { %1373 = vst.msk [vmem:[%s2535_s13 + $0x30] sm:$0xff] %vm1366_vm2, %v1340_v49  ;;  %v1209_v25 = vadd.f32 %v1208_v55, %v983_v53 }
 0x1f0   : > { %v1343_v57 = vadd.f32 %v2528_v5, %v1214_v11 }
 0x1f1   : > { %v1342_v62 = vadd.f32 %v2528_v5, %v1209_v25  ;;  %v1729_v20 = vpop.f32.mrb[10].mxu1  ;;  %v1809_v58 = vpop.f32.mrb[42].mxu0 }
 0x1f2   : > { %1376 = vst.msk [vmem:[%s2535_s13 + $0x48] sm:$0xff] %vm1366_vm2, %v1343_v57  ;;  %v1224_v34 = vadd.f32 %v1809_v58, %v1729_v20  ;;  %v993_v61 = vpop.f32.mrb[11].mxu1  ;;  %v1218_v0 = vpop.f32.mrb[43].mxu0 }
 0x1f3   : > { %1375 = vst.msk [vmem:[%s2535_s13 + $0x40] sm:$0xff] %vm1366_vm2, %v1342_v62  ;;  %v1219_v1 = vadd.f32 %v1218_v0, %v993_v61 }
 0x1f4   : > { %v1345_v19 = vadd.f32 %v2528_v5, %v1224_v34 }
 0x1f5   : > { %v1344_v28 = vadd.f32 %v2528_v5, %v1219_v1  ;;  %v1732_v50 = vpop.f32.mrb[12].mxu1  ;;  %v1812_v42 = vpop.f32.mrb[44].mxu0 }
 0x1f6   : > { %1378 = vst.msk [vmem:[%s2535_s13 + $0x58] sm:$0xff] %vm1366_vm2, %v1345_v19  ;;  %v1234_v3 = vadd.f32 %v1812_v42, %v1732_v50  ;;  %v1003_v21 = vpop.f32.mrb[13].mxu1  ;;  %v1228_v7 = vpop.f32.mrb[45].mxu0 }
 0x1f7   : > { %1377 = vst.msk [vmem:[%s2535_s13 + $0x50] sm:$0xff] %vm1366_vm2, %v1344_v28  ;;  %v1229_v8 = vadd.f32 %v1228_v7, %v1003_v21 }
 0x1f8   : > { %v1347_v22 = vadd.f32 %v2528_v5, %v1234_v3 }
 0x1f9   : > { %v1346_v9 = vadd.f32 %v2528_v5, %v1229_v8  ;;  %v1735_v59 = vpop.f32.mrb[14].mxu1  ;;  %v1815_v26 = vpop.f32.mrb[46].mxu0 }
 0x1fa   : > { %1380 = vst.msk [vmem:[%s2535_s13 + $0x68] sm:$0xff] %vm1366_vm2, %v1347_v22  ;;  %v1244_v12 = vadd.f32 %v1815_v26, %v1735_v59  ;;  %v1013_v47 = vpop.f32.mrb[15].mxu1  ;;  %v1238_v13 = vpop.f32.mrb[47].mxu0 }
 0x1fb   : > { %1379 = vst.msk [vmem:[%s2535_s13 + $0x60] sm:$0xff] %vm1366_vm2, %v1346_v9  ;;  %v1239_v15 = vadd.f32 %v1238_v13, %v1013_v47 }
 0x1fc   : > { %v1349_v14 = vadd.f32 %v2528_v5, %v1244_v12 }
 0x1fd   : > { %v1348_v54 = vadd.f32 %v2528_v5, %v1239_v15  ;;  %v1738_v48 = vpop.f32.mrb[16].mxu1  ;;  %v1818_v2 = vpop.f32.mrb[48].mxu0 }
 0x1fe   : > { %1382 = vst.msk [vmem:[%s2535_s13 + $0x78] sm:$0xff] %vm1366_vm2, %v1349_v14  ;;  %v1254_v4 = vadd.f32 %v1818_v2, %v1738_v48  ;;  %v1023_v43 = vpop.f32.mrb[17].mxu1  ;;  %v1248_v18 = vpop.f32.mrb[49].mxu0 }
 0x1ff   : > { %1381 = vst.msk [vmem:[%s2535_s13 + $0x70] sm:$0xff] %vm1366_vm2, %v1348_v54  ;;  %v1249_v23 = vadd.f32 %v1248_v18, %v1023_v43 }
 0x200   : > { %v1351_v24 = vadd.f32 %v2528_v5, %v1254_v4 }
 0x201   : > { %v1350_v29 = vadd.f32 %v2528_v5, %v1249_v23 }
 0x202   : > { %1384 = vst.msk [vmem:[%s2535_s13 + $0x88] sm:$0xff] %vm1366_vm2, %v1351_v24  ;;  %v1741_v38 = vpop.f32.mrb[18].mxu1  ;;  %v1821_v27 = vpop.f32.mrb[50].mxu0 }
 0x203   : > { %1383 = vst.msk [vmem:[%s2535_s13 + $0x80] sm:$0xff] %vm1366_vm2, %v1350_v29  ;;  %v1264_v30 = vadd.f32 %v1821_v27, %v1741_v38  ;;  %v1033_v31 = vpop.f32.mrb[19].mxu1  ;;  %v1258_v39 = vpop.f32.mrb[51].mxu0 }
 0x204   : > { %v1259_v46 = vadd.f32 %v1258_v39, %v1033_v31 }
 0x205   : > { %v1353_v17 = vadd.f32 %v2528_v5, %v1264_v30 }
 0x206   : > { %v1352_v10 = vadd.f32 %v2528_v5, %v1259_v46  ;;  %v1744_v60 = vpop.f32.mrb[20].mxu1  ;;  %v1824_v32 = vpop.f32.mrb[52].mxu0 }
 0x207   : > { %1386 = vst.msk [vmem:[%s2535_s13 + $0x98] sm:$0xff] %vm1366_vm2, %v1353_v17  ;;  %v1274_v33 = vadd.f32 %v1824_v32, %v1744_v60  ;;  %v1043_v35 = vpop.f32.mrb[21].mxu1  ;;  %v1268_v56 = vpop.f32.mrb[53].mxu0 }
 0x208   : > { %1385 = vst.msk [vmem:[%s2535_s13 + $0x90] sm:$0xff] %vm1366_vm2, %v1352_v10  ;;  %v1269_v36 = vadd.f32 %v1268_v56, %v1043_v35 }
 0x209   : > { %v1355_v40 = vadd.f32 %v2528_v5, %v1274_v33 }
 0x20a   : > { %v1354_v41 = vadd.f32 %v2528_v5, %v1269_v36 }
 0x20b   : > { %1388 = vst.msk [vmem:[%s2535_s13 + $0xa8] sm:$0xff] %vm1366_vm2, %v1355_v40 }
 0x20c   : > { %1387 = vst.msk [vmem:[%s2535_s13 + $0xa0] sm:$0xff] %vm1366_vm2, %v1354_v41 }
 0x21e   : > { %v1827_v45 = vpop.f32.mrb[22].mxu1 }
 0x21f   : > { %v1357_v6 = vadd.f32 %v1827_v45, %v2528_v5  ;;  %v1278_v16 = vpop.f32.mrb[23].mxu1 }
 0x220   : > { %v1356_v37 = vadd.f32 %v2528_v5, %v1278_v16 }
 0x221   : > { %1390 = vst.msk [vmem:[%s2535_s13 + $0xb8] sm:$0xff] %vm1366_vm2, %v1357_v6 }
 0x222   : > { %1389 = vst.msk [vmem:[%s2535_s13 + $0xb0] sm:$0xff] %vm1366_vm2, %v1356_v37  ;;  %v1830_v63 = vpop.f32.mrb[24].mxu1 }
 0x223   : > { %v1359_v44 = vadd.f32 %v1830_v63, %v2528_v5  ;;  %v1288_v49 = vpop.f32.mrb[25].mxu1 }
 0x224   : > { %v1358_v51 = vadd.f32 %v2528_v5, %v1288_v49 }
 0x225   : > { %1392 = vst.msk [vmem:[%s2535_s13 + $0xc8] sm:$0xff] %vm1366_vm2, %v1359_v44 }
 0x226   : > { %1391 = vst.msk [vmem:[%s2535_s13 + $0xc0] sm:$0xff] %vm1366_vm2, %v1358_v51  ;;  %v1833_v52 = vpop.f32.mrb[26].mxu1 }
 0x227   : > { %v1361_v11 = vadd.f32 %v1833_v52, %v2528_v5  ;;  %v1298_v53 = vpop.f32.mrb[27].mxu1 }
 0x228   : > { %v1360_v55 = vadd.f32 %v2528_v5, %v1298_v53 }
 0x229   : > { %1394 = vst.msk [vmem:[%s2535_s13 + $0xd8] sm:$0xff] %vm1366_vm2, %v1361_v11 }
 0x22a   : > { %1393 = vst.msk [vmem:[%s2535_s13 + $0xd0] sm:$0xff] %vm1366_vm2, %v1360_v55  ;;  %v1836_v25 = vpop.f32.mrb[28].mxu1 }
 0x22b   : > { %v1363_v57 = vadd.f32 %v1836_v25, %v2528_v5  ;;  %v1308_v62 = vpop.f32.mrb[29].mxu1 }
 0x22c   : > { %v1362_v20 = vadd.f32 %v2528_v5, %v1308_v62 }
 0x22d   : > { %1396 = vst.msk [vmem:[%s2535_s13 + $0xe8] sm:$0xff] %vm1366_vm2, %v1363_v57 }
 0x22e   : > { %1395 = vst.msk [vmem:[%s2535_s13 + $0xe0] sm:$0xff] %vm1366_vm2, %v1362_v20  ;;  %v1839_v58 = vpop.f32.mrb[30].mxu1 }
 0x22f   : > { %v1365_v34 = vadd.f32 %v1839_v58, %v2528_v5  ;;  %v1318_v61 = vpop.f32.mrb[31].mxu1 }
 0x230   : > { %v1364_v0 = vadd.f32 %v2528_v5, %v1318_v61 }
 0x231   : > { %1398 = vst.msk [vmem:[%s2535_s13 + $0xf8] sm:$0xff] %vm1366_vm2, %v1365_v34 }
 0x232   : > { %1397 = vst.msk [vmem:[%s2535_s13 + $0xf0] sm:$0xff] %vm1366_vm2, %v1364_v0 }
 0x233 PF: > { %s16_s21 = sadd.s32 1, %s2094_s21  }
 0x234   : > { %p13_p4 = scmp.ge.s32.totalorder %s16_s21, 4  }
 0x236   :  { %15 = sbr.rel (!%p13_p4) target bundleno = 1 (0x1), region = 74 }

</bundles_post_ra>
